<compile_context>
chip_gen: v7x
topology: tpu7x:2x2x1
jax: 0.10.0
libtpu: 0.0.40
codegen_flags: <defaults>
</compile_context>

<pallas_src>
import functools

import jax
import jax.numpy as jnp
from jax.experimental import pallas as pl
from jax.experimental.pallas import tpu as pltpu


def _round_up(x, m):
    return (x + m - 1) // m * m


def _fused_conv_in_relu_kernel(patches_ref, w_ref, b_ref, o_ref,
                               sum_ref, ssq_ref,
                               *, tile_p, num_p_tiles, p_true, eps):
    """Fused Conv(bias) + InstanceNorm + ReLU for one batch element.

    Grid: (N, num_p_tiles); the output block (1, P_pad, Cp) is indexed only by n,
    so it stays resident in VMEM across all spatial tiles of this batch element
    and is written back to HBM exactly once.
    """
    p_idx = pl.program_id(1)

    @pl.when(p_idx == 0)
    def _():
        sum_ref[...] = jnp.zeros_like(sum_ref)
        ssq_ref[...] = jnp.zeros_like(ssq_ref)

    # Conv as matmul on the MXU: bf16 operands, f32 accumulation.
    x = patches_ref[0]                                           # (TP, Kp) bf16
    y = jnp.dot(x, w_ref[...], preferred_element_type=jnp.float32)
    y = y + b_ref[...]                                           # (TP, Cp) f32

    off = pl.multiple_of(p_idx * tile_p, tile_p)
    o_ref[0, pl.ds(off, tile_p), :] = y                          # lane-dense (Cp % 128 == 0)

    if p_true % tile_p == 0:
        # No padded rows anywhere: accumulate unmasked.
        sum_ref[...] += jnp.sum(y, axis=0, keepdims=True)
        ssq_ref[...] += jnp.sum(y * y, axis=0, keepdims=True)
    else:
        # Only the last tile contains rows created by padding P up to a tile
        # multiple; mask them out of the statistics there and nowhere else.
        @pl.when(p_idx < num_p_tiles - 1)
        def _():
            sum_ref[...] += jnp.sum(y, axis=0, keepdims=True)
            ssq_ref[...] += jnp.sum(y * y, axis=0, keepdims=True)

        @pl.when(p_idx == num_p_tiles - 1)
        def _():
            rows = jax.lax.broadcasted_iota(jnp.int32, (tile_p, 1), 0) + off
            ym = jnp.where(rows < p_true, y, 0.0)
            sum_ref[...] += jnp.sum(ym, axis=0, keepdims=True)
            ssq_ref[...] += jnp.sum(ym * ym, axis=0, keepdims=True)

    @pl.when(p_idx == num_p_tiles - 1)
    def _():
        # InstanceNorm (biased variance, eps inside rsqrt) + ReLU, in place on
        # the VMEM-resident block.
        inv_p = 1.0 / p_true
        mean = sum_ref[...] * inv_p                              # (1, Cp)
        var = jnp.maximum(ssq_ref[...] * inv_p - mean * mean, 0.0)
        rstd = jax.lax.rsqrt(var + eps)

        def norm_tile(t, carry):
            toff = pl.multiple_of(t * tile_p, tile_p)
            yt = o_ref[0, pl.ds(toff, tile_p), :]
            o_ref[0, pl.ds(toff, tile_p), :] = jnp.maximum((yt - mean) * rstd, 0.0)
            return carry

        jax.lax.fori_loop(0, num_p_tiles, norm_tile, 0)


def conv_block_forward(x, weight, bias, *, stride=2, padding=1,
                       channels_last=False, eps=1e-5, tile_p=512):
    """x: (N, C_in, H, W) f32 NCHW; weight: (C_out, C_in, K, K); bias: (C_out,)."""
    N, C_in, H, W = x.shape
    C_out, _, K, _ = weight.shape

    # Reflect padding (padding_mode='reflect').
    x_pad = jnp.pad(x, ((0, 0), (0, 0), (padding, padding), (padding, padding)),
                    mode="reflect")
    Hp, Wp = H + 2 * padding, W + 2 * padding
    H_out = (Hp - K) // stride + 1
    W_out = (Wp - K) // stride + 1
    P = H_out * W_out
    Kdim = C_in * K * K

    # im2col -> (N, P, Kdim); patch features ordered (C_in, kh, kw) to match
    # PyTorch's (C_out, C_in, kh, kw) weight layout.
    # TODO(synk): build patch tiles in-kernel (manual DMA of overlapping row
    #   bands of padded NHWC input) to drop this XLA-side reshuffle.
    cols = []
    for kh in range(K):
        row = []
        for kw in range(K):
            sl = x_pad[:, :,
                       kh:kh + (H_out - 1) * stride + 1:stride,
                       kw:kw + (W_out - 1) * stride + 1:stride]
            row.append(sl)
        cols.append(jnp.stack(row, axis=2))
    patches = jnp.stack(cols, axis=2)                            # (N, C_in, K, K, Ho, Wo)
    patches = jnp.transpose(patches, (0, 4, 5, 1, 2, 3)).reshape(N, P, Kdim)

    # Spatial tiling: TP multiple of 16 (bf16 sublane packing); default 512
    # matches the 256-wide MXU M tile (raise to 1024 on v5e if desired).
    TP = tile_p if P >= tile_p else _round_up(P, 16)
    P_pad = _round_up(P, TP)
    num_p_tiles = P_pad // TP

    # Alignment: contraction dim and output channels padded to multiples of 128
    # (aligned MXU tiles, lane-dense unmasked output stores).
    Kp = _round_up(Kdim, 128)
    Cp = _round_up(C_out, 128)

    patches = jnp.pad(patches, ((0, 0), (0, P_pad - P), (0, Kp - Kdim)))
    patches = patches.astype(jnp.bfloat16)                       # bf16 MXU operand

    w_mat = weight.reshape(C_out, Kdim).T                        # (Kdim, C_out)
    w_mat = jnp.pad(w_mat, ((0, Kp - Kdim), (0, Cp - C_out))).astype(jnp.bfloat16)
    b_mat = jnp.pad(bias, (0, Cp - C_out)).reshape(1, Cp).astype(jnp.float32)

    # Scoped VMEM sized from the actual buffers (with headroom):
    # resident output block (x2 buffers) + double-buffered patch tiles + weights.
    # ~18 MiB at CycleGAN's largest down-conv -> fits v7x's 64 MiB/TC.
    vmem_bytes = (2 * P_pad * Cp * 4          # resident output block
                  + 2 * TP * Kp * 2           # patch tiles (bf16, double-buffered)
                  + 2 * Kp * Cp * 2           # weights (bf16)
                  + 2 * Cp * 4                # bias
                  + 2 * 2 * Cp * 4)           # stat scratch
    vmem_limit = int(min(96 * 2 ** 20, max(16 * 2 ** 20, int(vmem_bytes * 1.25))))

    out = pl.pallas_call(
        functools.partial(_fused_conv_in_relu_kernel, tile_p=TP,
                          num_p_tiles=num_p_tiles, p_true=P, eps=eps),
        out_shape=jax.ShapeDtypeStruct((N, P_pad, Cp), jnp.float32),
        grid_spec=pltpu.PrefetchScalarGridSpec(
            num_scalar_prefetch=0,
            grid=(N, num_p_tiles),
            in_specs=[
                pl.BlockSpec((1, TP, Kp), lambda n, p: (n, p, 0)),
                pl.BlockSpec((Kp, Cp), lambda n, p: (0, 0)),
                pl.BlockSpec((1, Cp), lambda n, p: (0, 0)),
            ],
            # Output block is revisited across the (arbitrary) P-tile axis:
            # stays in VMEM for all tiles of this n, written to HBM once.
            out_specs=pl.BlockSpec((1, P_pad, Cp), lambda n, p: (n, 0, 0)),
            scratch_shapes=[pltpu.VMEM((1, Cp), jnp.float32),    # per-channel sum
                            pltpu.VMEM((1, Cp), jnp.float32)],   # per-channel sumsq
        ),
        compiler_params=pltpu.CompilerParams(
            dimension_semantics=("parallel", "arbitrary"),
            vmem_limit_bytes=vmem_limit),
    )(patches, w_mat, b_mat)

    # Strip channel / spatial padding; kernel output is NHWC in HBM.
    out = out[:, :P, :C_out].reshape(N, H_out, W_out, C_out)
    if channels_last:
        return out                                               # skips the extra HBM transpose
    return jnp.transpose(out, (0, 3, 1, 2))                      # NCHW, matches PyTorch


def _reference(x, weight, bias, *, stride=2, padding=1, eps=1e-5):
    """Pure-JAX f32 reference of the ConvBlock forward."""
    xp = jnp.pad(x, ((0, 0), (0, 0), (padding, padding), (padding, padding)),
                 mode="reflect")
    y = jax.lax.conv_general_dilated(
        xp, weight, (stride, stride), "VALID",
        dimension_numbers=("NCHW", "OIHW", "NCHW"))
    y = y + bias[None, :, None, None]
    mean = jnp.mean(y, axis=(2, 3), keepdims=True)
    var = jnp.mean((y - mean) ** 2, axis=(2, 3), keepdims=True)
    y = (y - mean) * jax.lax.rsqrt(var + eps)
    return jnp.maximum(y, 0.0)


if __name__ == "__main__":
    # Small shapes consistent with the module's default (down=True) path.
    N, C_in, H, W = 2, 4, 16, 16
    C_out, K = 8, 3

    key = jax.random.PRNGKey(0)
    kx, kw, kb = jax.random.split(key, 3)
    x = jax.random.normal(kx, (N, C_in, H, W), dtype=jnp.float32)
    fan_in = C_in * K * K
    bound = 1.0 / (fan_in ** 0.5)
    weight = jax.random.uniform(kw, (C_out, C_in, K, K), jnp.float32, -bound, bound)
    bias = jax.random.uniform(kb, (C_out,), jnp.float32, -bound, bound)

    fwd = jax.jit(functools.partial(conv_block_forward, stride=2, padding=1))
    y = fwd(x, weight, bias)
    jax.block_until_ready(y)
    assert y.shape == (N, C_out, H // 2, W // 2), y.shape

    # Loose tolerance: matmul operands are bf16, statistics/normalization in f32.
    y_ref = _reference(x, weight, bias, stride=2, padding=1)
    err = float(jnp.max(jnp.abs(y - y_ref)))
    assert err < 0.15, f"max abs error too large: {err}"

    print("KERNEL_OK")
</pallas_src>

<mosaic_0001>
module attributes {stable_mosaic.version = 11 : i64} {
  func.func @_fused_conv_in_relu_kernel(%arg0: i32, %arg1: i32, %arg2: memref<1x64x128xbf16, #tpu.memory_space<vmem>>, %arg3: memref<128x128xbf16, #tpu.memory_space<vmem>>, %arg4: memref<1x128xf32, #tpu.memory_space<vmem>>, %arg5: memref<1x64x128xf32, #tpu.memory_space<vmem>>, %arg6: memref<1x128xf32, #tpu.memory_space<vmem>>, %arg7: memref<1x128xf32, #tpu.memory_space<vmem>>) attributes {dimension_semantics = [#tpu.dimension_semantics<parallel>, #tpu.dimension_semantics<arbitrary>], iteration_bounds = array<i64: 2, 1>, scalar_prefetch = 0 : i64, scratch_operands = 2 : i64, tpu.core_type = #tpu.core_type<tc>, window_params = [{transform_indices = @transform_0, window_bounds = array<i64: 1, 64, 128>}, {pipeline_mode = #tpu.pipeline_mode<synchronous>, transform_indices = @transform_1, window_bounds = array<i64: 128, 128>}, {pipeline_mode = #tpu.pipeline_mode<synchronous>, transform_indices = @transform_2, window_bounds = array<i64: 1, 128>}, {transform_indices = @transform_3, window_bounds = array<i64: 1, 64, 128>}]} {
    %c0_i32 = arith.constant 0 : i32
    %0 = arith.cmpi eq, %arg1, %c0_i32 : i32
    %1 = arith.extui %0 : i1 to i32
    %c0_i32_0 = arith.constant 0 : i32
    %2 = arith.cmpi ne, %1, %c0_i32_0 : i32
    scf.if %2 {
      %cst_21 = arith.constant 0.000000e+00 : f32
      %30 = vector.broadcast %cst_21 : f32 to vector<1x128xf32>
      %c0_22 = arith.constant 0 : index
      %c0_23 = arith.constant 0 : index
      %31 = vector.load %arg6[%c0_22, %c0_23] : memref<1x128xf32, #tpu.memory_space<vmem>>, vector<1x128xf32>
      tpu.vector_store %arg6[%c0_22, %c0_23], %30 {strides = array<i32>} : memref<1x128xf32, #tpu.memory_space<vmem>>, vector<1x128xf32>,
      %cst_24 = arith.constant 0.000000e+00 : f32
      %32 = vector.broadcast %cst_24 : f32 to vector<1x128xf32>
      %c0_25 = arith.constant 0 : index
      %c0_26 = arith.constant 0 : index
      %33 = vector.load %arg7[%c0_25, %c0_26] : memref<1x128xf32, #tpu.memory_space<vmem>>, vector<1x128xf32>
      tpu.vector_store %arg7[%c0_25, %c0_26], %32 {strides = array<i32>} : memref<1x128xf32, #tpu.memory_space<vmem>>, vector<1x128xf32>,
    } else {
    }
    %c0 = arith.constant 0 : index
    %c0_1 = arith.constant 0 : index
    %c0_2 = arith.constant 0 : index
    %3 = vector.load %arg2[%c0, %c0_1, %c0_2] : memref<1x64x128xbf16, #tpu.memory_space<vmem>>, vector<1x64x128xbf16>
    %4 = vector.shape_cast %3 : vector<1x64x128xbf16> to vector<64x128xbf16>
    %c0_3 = arith.constant 0 : index
    %c0_4 = arith.constant 0 : index
    %5 = vector.load %arg3[%c0_3, %c0_4] : memref<128x128xbf16, #tpu.memory_space<vmem>>, vector<128x128xbf16>
    %cst = arith.constant dense<0.000000e+00> : vector<64x128xf32>
    %6 = tpu.matmul %4, %5, %cst {dimension_numbers = #tpu.dot_dimension_numbers<[1], [0], [0], [1], [0, 0, 1, 1], [], []>} : vector<64x128xbf16>, vector<128x128xbf16>, vector<64x128xf32> -> vector<64x128xf32>
    %c0_5 = arith.constant 0 : index
    %c0_6 = arith.constant 0 : index
    %7 = vector.load %arg4[%c0_5, %c0_6] : memref<1x128xf32, #tpu.memory_space<vmem>>, vector<1x128xf32>
    %8 = vector.broadcast %7 : vector<1x128xf32> to vector<64x128xf32>
    %9 = arith.addf %6, %8 : vector<64x128xf32>
    %c64_i32 = arith.constant 64 : i32
    %10 = arith.muli %arg1, %c64_i32 : i32
    %11 = tpu.assume_multiple %10, 64 : i32
    %c0_7 = arith.constant 0 : index
    %12 = arith.index_cast %11 : i32 to index
    %c0_8 = arith.constant 0 : index
    %13 = vector.load %arg5[%c0_7, %12, %c0_8] : memref<1x64x128xf32, #tpu.memory_space<vmem>>, vector<1x64x128xf32>
    %14 = vector.shape_cast %13 : vector<1x64x128xf32> to vector<64x128xf32>
    %15 = vector.shape_cast %9 : vector<64x128xf32> to vector<1x64x128xf32>
    tpu.vector_store %arg5[%c0_7, %12, %c0_8], %15 {strides = array<i32>} : memref<1x64x128xf32, #tpu.memory_space<vmem>>, vector<1x64x128xf32>,
    %c0_9 = arith.constant 0 : index
    %c0_10 = arith.constant 0 : index
    %16 = vector.load %arg6[%c0_9, %c0_10] : memref<1x128xf32, #tpu.memory_space<vmem>>, vector<1x128xf32>
    %cst_11 = arith.constant dense<0.000000e+00> : vector<128xf32>
    %17 = vector.multi_reduction <add>, %9, %cst_11 [0] : vector<64x128xf32> to vector<128xf32>
    %18 = vector.shape_cast %17 : vector<128xf32> to vector<1x128xf32>
    %19 = arith.addf %16, %18 : vector<1x128xf32>
    %c0_12 = arith.constant 0 : index
    %c0_13 = arith.constant 0 : index
    %20 = vector.load %arg6[%c0_12, %c0_13] : memref<1x128xf32, #tpu.memory_space<vmem>>, vector<1x128xf32>
    tpu.vector_store %arg6[%c0_12, %c0_13], %19 {strides = array<i32>} : memref<1x128xf32, #tpu.memory_space<vmem>>, vector<1x128xf32>,
    %c0_14 = arith.constant 0 : index
    %c0_15 = arith.constant 0 : index
    %21 = vector.load %arg7[%c0_14, %c0_15] : memref<1x128xf32, #tpu.memory_space<vmem>>, vector<1x128xf32>
    %22 = arith.mulf %9, %9 : vector<64x128xf32>
    %cst_16 = arith.constant dense<0.000000e+00> : vector<128xf32>
    %23 = vector.multi_reduction <add>, %22, %cst_16 [0] : vector<64x128xf32> to vector<128xf32>
    %24 = vector.shape_cast %23 : vector<128xf32> to vector<1x128xf32>
    %25 = arith.addf %21, %24 : vector<1x128xf32>
    %c0_17 = arith.constant 0 : index
    %c0_18 = arith.constant 0 : index
    %26 = vector.load %arg7[%c0_17, %c0_18] : memref<1x128xf32, #tpu.memory_space<vmem>>, vector<1x128xf32>
    tpu.vector_store %arg7[%c0_17, %c0_18], %25 {strides = array<i32>} : memref<1x128xf32, #tpu.memory_space<vmem>>, vector<1x128xf32>,
    %c0_i32_19 = arith.constant 0 : i32
    %27 = arith.cmpi eq, %arg1, %c0_i32_19 : i32
    %28 = arith.extui %27 : i1 to i32
    %c0_i32_20 = arith.constant 0 : i32
    %29 = arith.cmpi ne, %28, %c0_i32_20 : i32
    scf.if %29 {
      %c0_21 = arith.constant 0 : index
      %c0_22 = arith.constant 0 : index
      %30 = vector.load %arg6[%c0_21, %c0_22] : memref<1x128xf32, #tpu.memory_space<vmem>>, vector<1x128xf32>
      %cst_23 = arith.constant 1.562500e-02 : f32
      %31 = vector.broadcast %cst_23 : f32 to vector<1x128xf32>
      %32 = arith.mulf %30, %31 : vector<1x128xf32>
      %c0_24 = arith.constant 0 : index
      %c0_25 = arith.constant 0 : index
      %33 = vector.load %arg7[%c0_24, %c0_25] : memref<1x128xf32, #tpu.memory_space<vmem>>, vector<1x128xf32>
      %cst_26 = arith.constant 1.562500e-02 : f32
      %34 = vector.broadcast %cst_26 : f32 to vector<1x128xf32>
      %35 = arith.mulf %33, %34 : vector<1x128xf32>
      %36 = arith.mulf %32, %32 : vector<1x128xf32>
      %37 = arith.subf %35, %36 : vector<1x128xf32>
      %cst_27 = arith.constant 0.000000e+00 : f32
      %38 = vector.broadcast %cst_27 : f32 to vector<1x128xf32>
      %39 = arith.maximumf %37, %38 : vector<1x128xf32>
      %cst_28 = arith.constant 9.99999974E-6 : f32
      %40 = vector.broadcast %cst_28 : f32 to vector<1x128xf32>
      %41 = arith.addf %39, %40 : vector<1x128xf32>
      %42 = math.rsqrt %41 : vector<1x128xf32>
      %c0_i32_29 = arith.constant 0 : i32
      %c64_i32_30 = arith.constant 64 : i32
      %43 = arith.muli %c0_i32_29, %c64_i32_30 : i32
      %44 = tpu.assume_multiple %43, 64 : i32
      %c0_31 = arith.constant 0 : index
      %45 = arith.index_cast %44 : i32 to index
      %c0_32 = arith.constant 0 : index
      %46 = vector.load %arg5[%c0_31, %45, %c0_32] : memref<1x64x128xf32, #tpu.memory_space<vmem>>, vector<1x64x128xf32>
      %47 = vector.shape_cast %46 : vector<1x64x128xf32> to vector<64x128xf32>
      %48 = vector.broadcast %32 : vector<1x128xf32> to vector<64x128xf32>
      %49 = arith.subf %47, %48 : vector<64x128xf32>
      %50 = vector.broadcast %42 : vector<1x128xf32> to vector<64x128xf32>
      %51 = arith.mulf %49, %50 : vector<64x128xf32>
      %cst_33 = arith.constant 0.000000e+00 : f32
      %52 = vector.broadcast %cst_33 : f32 to vector<64x128xf32>
      %53 = arith.maximumf %51, %52 : vector<64x128xf32>
      %c0_34 = arith.constant 0 : index
      %54 = arith.index_cast %44 : i32 to index
      %c0_35 = arith.constant 0 : index
      %55 = vector.load %arg5[%c0_34, %54, %c0_35] : memref<1x64x128xf32, #tpu.memory_space<vmem>>, vector<1x64x128xf32>
      %56 = vector.shape_cast %55 : vector<1x64x128xf32> to vector<64x128xf32>
      %57 = vector.shape_cast %53 : vector<64x128xf32> to vector<1x64x128xf32>
      tpu.vector_store %arg5[%c0_34, %54, %c0_35], %57 {strides = array<i32>} : memref<1x64x128xf32, #tpu.memory_space<vmem>>, vector<1x64x128xf32>,
      %c1_i32 = arith.constant 1 : i32
    } else {
    }
    return
  }
  func.func @transform_0(%arg0: i32, %arg1: i32) -> (i32, i32, i32) {
    %c0_i32 = arith.constant 0 : i32
    %c0_i32_0 = arith.constant 0 : i32
    return %arg0, %arg1, %c0_i32 : i32, i32, i32
  }
  func.func @transform_1(%arg0: i32, %arg1: i32) -> (i32, i32) {
    %c0_i32 = arith.constant 0 : i32
    %c0_i32_0 = arith.constant 0 : i32
    %c0_i32_1 = arith.constant 0 : i32
    return %c0_i32, %c0_i32_0 : i32, i32
  }
  func.func @transform_2(%arg0: i32, %arg1: i32) -> (i32, i32) {
    %c0_i32 = arith.constant 0 : i32
    %c0_i32_0 = arith.constant 0 : i32
    %c0_i32_1 = arith.constant 0 : i32
    return %c0_i32, %c0_i32_0 : i32, i32
  }
  func.func @transform_3(%arg0: i32, %arg1: i32) -> (i32, i32, i32) {
    %c0_i32 = arith.constant 0 : i32
    %c0_i32_0 = arith.constant 0 : i32
    %c0_i32_1 = arith.constant 0 : i32
    return %arg0, %c0_i32, %c0_i32_0 : i32, i32, i32
  }
}

</mosaic_0001>

<bundles_post_ra>
// kernel: conv_block_forward.1
= control target key start
LH: loop header
LB: loop body
LE: loop exit
PB: predicated region body
PF: predicated region fallthrough
CT: control target
= control target key end

     0   :  { %s721_s12 = smov 0   ;;  %s723_s13 = smov 0   ;;  %s833_s0 = inlined_call_operand.vmem [shape: bf16[2,64,128], index: 0, kind: input, shape index: {}]   ;;  %s834_s1 = inlined_call_operand.vmem [shape: bf16[128,128], index: 1, kind: input, shape index: {}]   ;;  %s835_s2 = inlined_call_operand.vmem [shape: f32[1,128], index: 2, kind: input, shape index: {}]   ;;  %s836_s3 = inlined_call_operand.vmem [shape: f32[2,64,128], index: 3, kind: output, shape index: {}]  }
   0x1   :  { %s725_s14 = smov 0  }
   0x2 LB: > { %s25_s15 = sadd.s32 1, %s694_s13  ;;  %p563_p0 = scmp.ge.s32.totalorder %s698_s14, 1  ;;  %s698_s14 = sphi %s725_s14, %s13_s14   ;;  %s694_s13 = sphi %s723_s13, %s838_s13   ;;  %s690_s12 = sphi %s721_s12, %s837_s12  }
   0x3   : > { %p27_p1 = scmp.ge.s32.totalorder %s25_s15, 2  ;;  %p156_p2 = scmp.lt.s32.totalorder %s698_s14, 3 }
   0x5   : > { %s840_s15 = smov (%p27_p1, %s25_s15), 0  ;;  %p157_p3 = pnand %p563_p0, %p156_p2 }
   0x6   : > { %v662_v0 = vld [vmem:[%s834_s1] sm:$0xff] (!%p157_p3)   ;;  %p185_p4 = scmp.lt.s32.totalorder (!%p157_p3), %s690_s12, 1  ;;  %v663_v1 = vld [vmem:[%s834_s1 + $0x8] sm:$0xff] (!%p157_p3)   ;;  %v664_v2 = vld [vmem:[%s834_s1 + $0x10] sm:$0xff] (!%p157_p3)   ;;  %v700_v12 = vmov (!%p157_p3), 0.0  }
   0x7   : > { %160 = sbr.rel (%p157_p3) target bundleno = 323 (0x143), region = 32  ;;  %597 = vmatprep.subr.bf16.mxu0 (!%p157_p3), %v662_v0  ;;  %621 = vmatprep.subr.bf16.mxu1 (!%p157_p3), %v662_v0  ;;  %v665_v3 = vld [vmem:[%s834_s1 + $0x18] sm:$0xff] (!%p157_p3)   ;;  %v666_v6 = vld [vmem:[%s834_s1 + $0x20] sm:$0xff] (!%p157_p3)   ;;  %v667_v7 = vld [vmem:[%s834_s1 + $0x28] sm:$0xff] (!%p157_p3)   ;;  %204 = vst [vmem:[#allocation2] sm:$0x1] (!%p157_p3), %v700_v12 }
   0x8   : > { %598 = vmatpush3.bf16.msra.mxu0 (!%p157_p3), %v662_v0  ;;  %629 = vmatpush3.bf16.msra.mxu1 (!%p157_p3), %v662_v0  ;;  %v668_v8 = vld [vmem:[%s834_s1 + $0x30] sm:$0xff] (!%p157_p3)   ;;  %v669_v9 = vld [vmem:[%s834_s1 + $0x38] sm:$0xff] (!%p157_p3)   ;;  %205 = vst [vmem:[#allocation3] sm:$0x1] (!%p157_p3), %v700_v12  ;;  %v568_v13 = vld [vmem:[%s835_s2] ss:$0 sm:$0xff] (!%p157_p3) }
   0x9   : > { %599 = vmatprep.subr.bf16.mxu0 (!%p157_p3), %v663_v1  ;;  %622 = vmatprep.subr.bf16.mxu1 (!%p157_p3), %v663_v1 }
   0xc   : > { %600 = vmatpush3.bf16.msra.mxu0 (!%p157_p3), %v663_v1  ;;  %630 = vmatpush3.bf16.msra.mxu1 (!%p157_p3), %v663_v1 }
   0xd   : > { %601 = vmatprep.subr.bf16.mxu0 (!%p157_p3), %v664_v2  ;;  %623 = vmatprep.subr.bf16.mxu1 (!%p157_p3), %v664_v2 }
   0xe   : > { %s842_s12 = smov (!%p185_p4, %s690_s12), 1  ;;  %v384_v61 = vld [vmem:[#allocation2] sm:$0x1] }
   0xf   : > { %s583_s22 = sshll.u32 %s842_s12, 5  ;;  %v400_v0 = vld [vmem:[#allocation3] sm:$0x1]  ;;  %s584_s11 = sshll.u32 %s842_s12, 6 }
  0x10   : > { %s754_s25 = scalar_lea.vmem %s833_s0, %s583_s22  ;;  %602 = vmatpush3.bf16.msra.mxu0 %v664_v2  ;;  %631 = vmatpush3.bf16.msra.mxu1 %v664_v2  ;;  %s198_s17 = scalar_lea.vmem %s836_s3, %s584_s11 }
  0x11   : > { %v670_v4 = vld [vmem:[%s754_s25] sm:$0xff]   ;;  %v672_v5 = vld [vmem:[%s754_s25 + $0x10] sm:$0xff]   ;;  %603 = vmatprep.subr.bf16.mxu0 %v665_v3  ;;  %624 = vmatprep.subr.bf16.mxu1 %v665_v3  ;;  %v671_v10 = vld [vmem:[%s754_s25 + $0x8] sm:$0xff]  }
  0x12   : > { %613 = vmatprep.mubr.bf16.mxu0 %v670_v4  ;;  %617 = vmatprep.mubr.bf16.mxu1 %v672_v5  ;;  %v673_v11 = vld [vmem:[%s754_s25 + $0x18] sm:$0xff]  }
  0x14   : > { %604 = vmatpush3.bf16.msra.mxu0 %v665_v3  ;;  %632 = vmatpush3.bf16.msra.mxu1 %v665_v3 }
  0x15   : > { %605 = vmatprep.subr.bf16.mxu0 %v666_v6  ;;  %625 = vmatprep.subr.bf16.mxu1 %v666_v6 }
  0x18   : > { %606 = vmatpush3.bf16.msra.mxu0 %v666_v6  ;;  %633 = vmatpush3.bf16.msra.mxu1 %v666_v6 }
  0x19   : > { %607 = vmatprep.subr.bf16.mxu0 %v667_v7  ;;  %626 = vmatprep.subr.bf16.mxu1 %v667_v7 }
  0x1c   : > { %608 = vmatpush3.bf16.msra.mxu0 %v667_v7  ;;  %634 = vmatpush3.bf16.msra.mxu1 %v667_v7 }
  0x1d   : > { %609 = vmatprep.subr.bf16.mxu0 %v668_v8  ;;  %627 = vmatprep.subr.bf16.mxu1 %v668_v8 }
  0x20   : > { %610 = vmatpush3.bf16.msra.mxu0 %v668_v8  ;;  %635 = vmatpush3.bf16.msra.mxu1 %v668_v8 }
  0x21   : > { %611 = vmatprep.subr.bf16.mxu0 %v669_v9  ;;  %628 = vmatprep.subr.bf16.mxu1 %v669_v9 }
  0x24   : > { %612 = vmatpush3.bf16.msra.mxu0 %v669_v9  ;;  %636 = vmatpush3.bf16.msra.mxu1 %v669_v9 }
  0x27   : > { %614 = vmatmul.mubr.bf16.vlgmr.msra.gmra.mrb[0].mxu0 %v671_v10  ;;  %618 = vmatmul.mubr.bf16.vlgmr.msra.gmra.mrb[0].mxu1 %v673_v11  ;;  %v445_v10 = vlaneseq }
  0xfa   : > { %v615_v14 = vpop.f32.mrb[0].mxu0  ;;  %v619_v15 = vpop.f32.mrb[0].mxu1 }
  0xfb   : > { %v343_v16 = vpop.f32.mrb[1].mxu0  ;;  %v359_v17 = vpop.f32.mrb[1].mxu1  ;;  %v780_v23 = vadd.f32 %v615_v14, %v568_v13  ;;  %v804_v38 = vadd.f32 %v619_v15, %v568_v13 }
  0xfc   : > { %v778_v18 = vadd.f32 %v568_v13, %v343_v16  ;;  %v616_v19 = vpop.f32.mrb[2].mxu0  ;;  %v620_v20 = vpop.f32.mrb[2].mxu1  ;;  %v784_v25 = vadd.f32 %v568_v13, %v359_v17 }
  0xfd   : > { %v346_v21 = vpop.f32.mrb[3].mxu0  ;;  %v362_v22 = vpop.f32.mrb[3].mxu1  ;;  %v788_v27 = vadd.f32 %v616_v19, %v568_v13  ;;  %v403_v30 = vmul.f32 %v780_v23, %v780_v23  ;;  %v371_v42 = vadd.f32 %v620_v20, %v568_v13  ;;  %v407_v45 = vmul.f32 %v804_v38, %v804_v38 }
  0xfe   : > { %v782_v24 = vadd.f32 %v568_v13, %v346_v21  ;;  %v401_v26 = vmul.f32 %v778_v18, %v778_v18  ;;  %v405_v33 = vmul.f32 %v784_v25, %v784_v25  ;;  %v802_v37 = vadd.f32 %v568_v13, %v362_v22 }
  0xff   : > { %v404_v34 = vmul.f32 %v788_v27, %v788_v27  ;;  %v408_v48 = vmul.f32 %v371_v42, %v371_v42  ;;  %v446_v13 = vshrl.u32 %v445_v10, 7 }
 0x100   : > { %v385_v28 = vadd.f32 %v782_v24, %v778_v18  ;;  %v402_v29 = vmul.f32 %v782_v24, %v782_v24  ;;  %v406_v44 = vmul.f32 %v802_v37, %v802_v37 }
 0x101   : > { %v447_v14 = vsub.s32 0, %v446_v13 }
 0x102   : > { %v386_v31 = vadd.f32 %v385_v28, %v780_v23  ;;  %v409_v32 = vadd.f32 %v402_v29, %v401_v26 }
 0x104   : > { %v410_v35 = vadd.f32 %v409_v32, %v403_v30  ;;  %v387_v36 = vadd.f32 %v386_v31, %v788_v27 }
 0x106   : > { %v388_v39 = vadd.f32 %v387_v36, %v784_v25  ;;  %v411_v40 = vadd.f32 %v410_v35, %v404_v34 }
 0x108   : > { %v412_v41 = vadd.f32 %v411_v40, %v405_v33  ;;  %v389_v43 = vadd.f32 %v388_v39, %v802_v37 }
 0x10a   : > { %v390_v46 = vadd.f32 %v389_v43, %v804_v38  ;;  %v413_v47 = vadd.f32 %v412_v41, %v406_v44 }
 0x10c   : > { %v391_v49 = vadd.f32 %v390_v46, %v371_v42  ;;  %v414_v50 = vadd.f32 %v413_v47, %v407_v45 }
 0x10e   : > { %v392_v51 = vrot.slane %v391_v49, 4  ;;  %v415_v52 = vadd.f32 %v414_v50, %v408_v48 }
 0x110   : > { %v393_v53 = vadd.f32 %v392_v51, %v391_v49  ;;  %v416_v54 = vrot.slane %v415_v52, 4 }
 0x112   : > { %v394_v55 = vrot.slane %v393_v53, 2  ;;  %v417_v56 = vadd.f32 %v416_v54, %v415_v52 }
 0x114   : > { %v395_v57 = vadd.f32 %v394_v55, %v393_v53  ;;  %v418_v58 = vrot.slane %v417_v56, 2 }
 0x116   : > { %v396_v59 = vrot.slane %v395_v57, 1  ;;  %v419_v60 = vadd.f32 %v418_v58, %v417_v56 }
 0x118   : > { %v397_v62 = vadd.f32 %v396_v59, %v395_v57  ;;  %v420_v63 = vrot.slane %v419_v60, 1 }
 0x11a   : > { %v398_v1 = vadd.f32 %v397_v62, %v384_v61  ;;  %v421_v2 = vadd.f32 %v420_v63, %v419_v60 }
 0x11c   : > { %399 = vst [vmem:[#allocation2] sm:$0x1] %v398_v1  ;;  %v422_v3 = vadd.f32 %v421_v2, %v400_v0 }
 0x11e   : > { %423 = vst [vmem:[#allocation3] sm:$0x1] %v422_v3 }
 0x123   : > { %v427_v4 = vld [vmem:[#allocation2] sm:$0x1] }
 0x124   : > { %v428_v5 = vmul.f32 0.015625, %v427_v4 }
 0x125   : > { %v429_v6 = vld [vmem:[#allocation3] sm:$0x1] }
 0x126   : > { %v430_v7 = vmul.f32 0.015625, %v429_v6  ;;  %v431_v8 = vmul.f32 %v428_v5, %v428_v5  ;;  %v448_v15 = vrot.slane %v428_v5, %v447_v14 }
 0x128   : > { %v432_v9 = vsub.f32 %v430_v7, %v431_v8  ;;  %v450_v17 = vsub.f32 %v778_v18, %v448_v15  ;;  %v451_v19 = vsub.f32 %v782_v24, %v448_v15  ;;  %v452_v20 = vsub.f32 %v780_v23, %v448_v15 }
 0x129   : > { %v453_v21 = vsub.f32 %v788_v27, %v448_v15  ;;  %v454_v26 = vsub.f32 %v784_v25, %v448_v15  ;;  %v455_v28 = vsub.f32 %v802_v37, %v448_v15  ;;  %v456_v29 = vsub.f32 %v804_v38, %v448_v15 }
 0x12a   : > { %v433_v11 = vmax.f32 %v432_v9, 0.0  ;;  %v457_v30 = vsub.f32 %v371_v42, %v448_v15 }
 0x12c   : > { %v434_v12 = vadd.f32 1e-05, %v433_v11 }
 0x12e   : > { %674 = vrsqrt.f32 %v434_v12 }
 0x138   : > { %v675_v16 = vpop.eup %674 }
 0x139   : > { %v462_v22 = vrot.slane %v675_v16, %v447_v14 }
 0x13b   : > { %v464_v31 = vmul.f32 %v462_v22, %v450_v17  ;;  %v465_v32 = vmul.f32 %v462_v22, %v451_v19  ;;  %v466_v33 = vmul.f32 %v462_v22, %v452_v20  ;;  %v467_v34 = vmul.f32 %v462_v22, %v453_v21 }
 0x13c   : > { %v468_v18 = vmul.f32 %v462_v22, %v454_v26  ;;  %v469_v23 = vmul.f32 %v462_v22, %v455_v28  ;;  %v470_v24 = vmul.f32 %v462_v22, %v456_v29  ;;  %v471_v27 = vmul.f32 %v462_v22, %v457_v30 }
 0x13d   : > { %v472_v35 = vmax.f32 %v464_v31, 0.0  ;;  %v473_v36 = vmax.f32 %v465_v32, 0.0  ;;  %v474_v25 = vmax.f32 %v466_v33, 0.0  ;;  %v475_v39 = vmax.f32 %v467_v34, 0.0 }
 0x13e   : > { %v476_v37 = vmax.f32 %v468_v18, 0.0  ;;  %v477_v40 = vmax.f32 %v469_v23, 0.0  ;;  %v478_v38 = vmax.f32 %v470_v24, 0.0  ;;  %v479_v41 = vmax.f32 %v471_v27, 0.0 }
 0x13f   : > { %480 = vst [vmem:[%s198_s17] sm:$0xff] %v472_v35  ;;  %481 = vst [vmem:[%s198_s17 + $0x8] sm:$0xff] %v473_v36 }
 0x140   : > { %482 = vst [vmem:[%s198_s17 + $0x10] sm:$0xff] %v474_v25  ;;  %483 = vst [vmem:[%s198_s17 + $0x18] sm:$0xff] %v475_v39 }
 0x141   : > { %484 = vst [vmem:[%s198_s17 + $0x20] sm:$0xff] %v476_v37  ;;  %485 = vst [vmem:[%s198_s17 + $0x28] sm:$0xff] %v477_v40 }
 0x142   : > { %486 = vst [vmem:[%s198_s17 + $0x30] sm:$0xff] %v478_v38  ;;  %487 = vst [vmem:[%s198_s17 + $0x38] sm:$0xff] %v479_v41 }
 0x143 PF: > { %s13_s14 = sadd.s32 1, %s698_s14   ;;  %s837_s12 = smov %s694_s13 }
 0x144   : > { %p10_p5 = scmp.ge.s32.totalorder %s13_s14, 4   ;;  %s838_s13 = smov %s840_s15 }
 0x146   :  { %12 = sbr.rel (!%p10_p5) target bundleno = 2 (0x2), region = 71 }

</bundles_post_ra>
